<compile_context>
chip_gen: v5e
topology: v5e:2x2
jax: 0.10.0
libtpu: 0.0.40
codegen_flags: <defaults>
</compile_context>

<pallas_src>
import functools
import math

import numpy as np
import jax
import jax.numpy as jnp
from jax.experimental import pallas as pl
from jax.experimental.pallas import tpu as pltpu


# ----------------------------------------------------------------------------
# Buffer setup (numpy float64 glue, mirrors Q0Dist.__init__ with Prior.SE)
# ----------------------------------------------------------------------------
def build_q0dist_buffers(context_freqs, prediction_length, freq, gamma=1.0, iso=1e-4):
    context_length = context_freqs * prediction_length
    window_length = context_length + prediction_length
    C, P = context_length, prediction_length
    assert C % freq == 0, "context_length must be a multiple of freq"
    assert P % freq == 0, "prediction_length must be a multiple of freq"

    t = np.arange(window_length, dtype=np.float64) * (np.pi / freq)
    cov = np.exp(-gamma * (t[None, :] - t[:, None]) ** 2) \
        + iso * np.eye(window_length)

    K = cov[:C, :C] + 1e-4 * np.eye(C)
    K_star = cov[:C, C:]
    K_star_star = cov[C:, C:]
    K_inv = np.linalg.inv(K)
    K_inv_x_K_star = K_inv @ K_star                        # [C, P]
    cov_reg = K_star_star - K_star.T @ K_inv_x_K_star      # [P, P]
    cov_inv = np.linalg.inv(cov)                           # [W, W]
    _, logdet = np.linalg.slogdet(cov)

    # Fused gp_regression operator (review opt #1):
    #   mean = (x - tile_C(loc_freq)) @ K_inv_x_K_star + tile_P(loc_freq)
    #        = x @ [ (I - M) @ K_inv_x_K_star + T ]         (linear in x)
    # where M[i,j] = 1/n_rep if i ≡ j (mod freq)   (C×C averaging+tiling op)
    #       T[i,j] = 1/n_rep if i ≡ j (mod freq)   (C×P tiling of per-freq mean)
    n_rep = C // freq
    idx_c = np.arange(C) % freq
    idx_p = np.arange(P) % freq
    M = (idx_c[:, None] == idx_c[None, :]).astype(np.float64) / n_rep
    T = (idx_c[:, None] == idx_p[None, :]).astype(np.float64) / n_rep
    W_fused = (np.eye(C) - M) @ K_inv_x_K_star + T         # [C, P]

    return dict(
        cov_inv=jnp.asarray(cov_inv, dtype=jnp.float32),
        K_inv_x_K_star=jnp.asarray(K_inv_x_K_star, dtype=jnp.float32),
        cov_reg=jnp.asarray(cov_reg, dtype=jnp.float32),
        gp_weight_T=jnp.asarray(W_fused.T, dtype=jnp.float32),   # [P, C]
        logdet=float(logdet),
        window_length=window_length,
        context_length=C,
        prediction_length=P,
        freq=freq,
    )


# ----------------------------------------------------------------------------
# Batch tiling helpers (batch lives on the lane axis inside the kernels)
# ----------------------------------------------------------------------------
_MAX_BATCH_TILE = 256  # lanes per grid step (multiple of 128 when tiling)


def _round_up(n, m):
    return -(-n // m) * m


def _pick_batch_tile(batch):
    """Returns (padded_batch, tile). Tile is either the full padded batch
    (always a legal block: lane dim == full array dim) or a multiple of 128."""
    if batch <= _MAX_BATCH_TILE:
        b_pad = _round_up(max(batch, 1), 8)
        return b_pad, b_pad
    b_pad = _round_up(batch, _MAX_BATCH_TILE)
    return b_pad, _MAX_BATCH_TILE


def _vmem_limit_bytes(block_bytes):
    # double-buffered blocks + headroom; stay within v7x's 64 MiB physical VMEM
    return int(min(64 * 1024 * 1024,
                   max(8 * 1024 * 1024, 2 * block_bytes + (2 << 20))))


# ----------------------------------------------------------------------------
# Pallas kernel 1: gp_regression posterior mean  (single MXU pass per tile)
#   out.T[:, tile] = W_fused.T @ x.T[:, tile]
# ----------------------------------------------------------------------------
def _gp_mean_kernel(wT_ref, xT_ref, out_ref):
    out_ref[...] = jnp.dot(wT_ref[...], xT_ref[...],
                           preferred_element_type=jnp.float32)


def gp_regression_mean(x, gp_weight_T):
    """x: [B, C] f32, gp_weight_T: [P, C] f32 -> posterior mean [B, P] f32.
    (Posterior covariance is the constant precomputed buffer `cov_reg`.)"""
    B, C = x.shape
    P, C2 = gp_weight_T.shape
    assert C == C2
    b_pad, tb = _pick_batch_tile(B)
    xT = jnp.pad(x.astype(jnp.float32).T, ((0, 0), (0, b_pad - B)))  # [C, b_pad]

    block_bytes = 4 * (P * C + C * tb + P * tb)
    out_T = pl.pallas_call(
        _gp_mean_kernel,
        out_shape=jax.ShapeDtypeStruct((P, b_pad), jnp.float32),
        grid=(b_pad // tb,),
        in_specs=[
            pl.BlockSpec((P, C), lambda i: (0, 0)),     # fused weight, VMEM-resident
            pl.BlockSpec((C, tb), lambda i: (0, i)),    # batch-on-lanes tile
        ],
        out_specs=pl.BlockSpec((P, tb), lambda i: (0, i)),
        compiler_params=pltpu.CompilerParams(
            dimension_semantics=("parallel",),
            vmem_limit_bytes=_vmem_limit_bytes(block_bytes)),
    )(gp_weight_T, xT)
    return out_T[:, :B].T


# ----------------------------------------------------------------------------
# Pallas kernel 2: log_likelihood (== -dist.log_prob(x), zero mean)
#   nll[b] = 0.5 * x[b] Σ^{-1} x[b]ᵀ + 0.5*logdet + 0.5*W*log(2π)
# Batch is on lanes, so the quadratic-form reduction is a cross-sublane sum
# producing a lane-dense [1, TB] output (no masked last-dim-1 stores).
# ----------------------------------------------------------------------------
def _nll_kernel(cinv_ref, xT_ref, out_ref, *, const):
    xT = xT_ref[...]                                                  # [W, TB]
    q = jnp.dot(cinv_ref[...], xT, preferred_element_type=jnp.float32)
    out_ref[...] = 0.5 * jnp.sum(q * xT, axis=0, keepdims=True) + const


def log_likelihood(x, cov_inv, logdet):
    """Matches Q0Dist.log_likelihood: returns the *negative* log-likelihood
    (-MV.log_prob) per batch element."""
    B, W = x.shape
    const = 0.5 * (logdet + W * math.log(2.0 * math.pi))
    b_pad, tb = _pick_batch_tile(B)
    xT = jnp.pad(x.astype(jnp.float32).T, ((0, 0), (0, b_pad - B)))   # [W, b_pad]

    block_bytes = 4 * (W * W + W * tb + tb)
    out = pl.pallas_call(
        functools.partial(_nll_kernel, const=const),
        out_shape=jax.ShapeDtypeStruct((1, b_pad), jnp.float32),
        grid=(b_pad // tb,),
        in_specs=[
            pl.BlockSpec((W, W), lambda i: (0, 0)),     # cov_inv, VMEM-resident
            pl.BlockSpec((W, tb), lambda i: (0, i)),    # batch-on-lanes tile
        ],
        out_specs=pl.BlockSpec((1, tb), lambda i: (0, i)),
        compiler_params=pltpu.CompilerParams(
            dimension_semantics=("parallel",),
            vmem_limit_bytes=_vmem_limit_bytes(block_bytes)),
    )(cov_inv, xT)
    return out[0, :B]


# ----------------------------------------------------------------------------
# Pure-JAX references (mirror the original torch math) for correctness checks
# ----------------------------------------------------------------------------
def gp_regression_mean_ref(x, K_inv_x_K_star, freq, prediction_length):
    B = x.shape[0]
    loc_freq = x.reshape(B, -1, freq).mean(axis=1)                    # [B, freq]
    repeat_factor = K_inv_x_K_star.shape[0] // freq
    x_centered = x - jnp.tile(loc_freq, (1, repeat_factor))
    mean = x_centered @ K_inv_x_K_star
    return mean + jnp.tile(loc_freq, (1, prediction_length // freq))


def log_likelihood_ref(x, cov_inv, logdet):
    W = x.shape[1]
    quad = jnp.einsum("bi,ij,bj->b", x, cov_inv, x)
    return 0.5 * quad + 0.5 * (logdet + W * math.log(2.0 * math.pi))


# ----------------------------------------------------------------------------
if __name__ == "__main__":
    # small, module-consistent shapes
    context_freqs = 3
    prediction_length = 16
    freq = 8
    batch = 4

    bufs = build_q0dist_buffers(context_freqs, prediction_length, freq,
                                gamma=1.0, iso=1e-4)
    C = bufs["context_length"]        # 48
    Wlen = bufs["window_length"]      # 64
    P = bufs["prediction_length"]     # 16

    key = jax.random.PRNGKey(0)
    k1, k2 = jax.random.split(key)
    x_ctx = jax.random.normal(k1, (batch, C), dtype=jnp.float32)      # gp_regression input
    x_win = jax.random.normal(k2, (batch, Wlen), dtype=jnp.float32)   # log_likelihood input

    # gp_regression posterior mean (Pallas, fused single-matmul kernel)
    mean = gp_regression_mean(x_ctx, bufs["gp_weight_T"])
    mean = jax.block_until_ready(mean)
    mean_ref = gp_regression_mean_ref(x_ctx, bufs["K_inv_x_K_star"], freq, P)

    # log_likelihood / NLL (Pallas, lane-dense quadratic form)
    nll = log_likelihood(x_win, bufs["cov_inv"], bufs["logdet"])
    nll = jax.block_until_ready(nll)
    nll_ref = log_likelihood_ref(x_win, bufs["cov_inv"], bufs["logdet"])

    assert mean.shape == (batch, P)
    assert nll.shape == (batch,)
    assert jnp.allclose(mean, mean_ref, rtol=1e-4, atol=1e-3), "gp_regression mismatch"
    assert jnp.allclose(nll, nll_ref, rtol=1e-4, atol=1e-2), "log_likelihood mismatch"

    print("KERNEL_OK")
</pallas_src>

<mosaic_0001>
module attributes {stable_mosaic.version = 11 : i64} {
  func.func @_gp_mean_kernel(%arg0: i32, %arg1: memref<16x48xf32, #tpu.memory_space<vmem>>, %arg2: memref<48x8xf32, #tpu.memory_space<vmem>>, %arg3: memref<16x8xf32, #tpu.memory_space<vmem>>) attributes {dimension_semantics = [#tpu.dimension_semantics<parallel>], iteration_bounds = array<i64: 1>, scalar_prefetch = 0 : i64, scratch_operands = 0 : i64, tpu.core_type = #tpu.core_type<tc>, window_params = [{pipeline_mode = #tpu.pipeline_mode<synchronous>, transform_indices = @transform_0, window_bounds = array<i64: 16, 48>}, {transform_indices = @transform_1, window_bounds = array<i64: 48, 8>}, {transform_indices = @transform_2, window_bounds = array<i64: 16, 8>}]} {
    %c0 = arith.constant 0 : index
    %c0_0 = arith.constant 0 : index
    %0 = vector.load %arg1[%c0, %c0_0] : memref<16x48xf32, #tpu.memory_space<vmem>>, vector<16x48xf32>
    %c0_1 = arith.constant 0 : index
    %c0_2 = arith.constant 0 : index
    %1 = vector.load %arg2[%c0_1, %c0_2] : memref<48x8xf32, #tpu.memory_space<vmem>>, vector<48x8xf32>
    %cst = arith.constant dense<0.000000e+00> : vector<16x8xf32>
    %2 = tpu.matmul %0, %1, %cst {dimension_numbers = #tpu.dot_dimension_numbers<[1], [0], [0], [1], [0, 0, 1, 1], [], []>} : vector<16x48xf32>, vector<48x8xf32>, vector<16x8xf32> -> vector<16x8xf32>
    %c0_3 = arith.constant 0 : index
    %c0_4 = arith.constant 0 : index
    %3 = vector.load %arg3[%c0_3, %c0_4] : memref<16x8xf32, #tpu.memory_space<vmem>>, vector<16x8xf32>
    tpu.vector_store %arg3[%c0_3, %c0_4], %2 {strides = array<i32>} : memref<16x8xf32, #tpu.memory_space<vmem>>, vector<16x8xf32>,
    return
  }
  func.func @transform_0(%arg0: i32) -> (i32, i32) {
    %c0_i32 = arith.constant 0 : i32
    %c0_i32_0 = arith.constant 0 : i32
    %c0_i32_1 = arith.constant 0 : i32
    return %c0_i32, %c0_i32_0 : i32, i32
  }
  func.func @transform_1(%arg0: i32) -> (i32, i32) {
    %c0_i32 = arith.constant 0 : i32
    %c0_i32_0 = arith.constant 0 : i32
    return %c0_i32, %arg0 : i32, i32
  }
  func.func @transform_2(%arg0: i32) -> (i32, i32) {
    %c0_i32 = arith.constant 0 : i32
    %c0_i32_0 = arith.constant 0 : i32
    return %c0_i32, %arg0 : i32, i32
  }
}

</mosaic_0001>

<bundles_post_ra>
// kernel: tpu_custom_call.1
= control target key start
LH: loop header
LB: loop body
LE: loop exit
PB: predicated region body
PF: predicated region fallthrough
CT: control target
= control target key end

     0   :  { %vm19_vm0 = vcmask 392192   ;;  %vm49_vm1 = vcmask 64512   ;;  %s109_s1 = inlined_call_operand.vmem [shape: f32[48,8], index: 1, kind: input, shape index: {}]   ;;  %s110_s0 = inlined_call_operand.vmem [shape: f32[16,48], index: 0, kind: input, shape index: {}]   ;;  %s111_s2 = inlined_call_operand.vmem [shape: f32[16,8], index: 2, kind: output, shape index: {}]  }
   0x1   :  { %v18_v0 = vld [vmem:[%s109_s1 + $0x28] sm:$0xff]  ;;  %v17_v1 = vld [vmem:[%s109_s1 + $0x20] sm:$0xff]  ;;  %v16_v2 = vld [vmem:[%s109_s1 + $0x18] sm:$0xff] }
   0x2   :  { %36 = vmatpush.msra.mxu0 %v18_v0  ;;  %58 = vmatpush.msra.mxu1 %v18_v0  ;;  %v15_v3 = vld [vmem:[%s109_s1 + $0x10] sm:$0xff]  ;;  %v14_v4 = vld [vmem:[%s109_s1 + $0x8] sm:$0xff]  ;;  %v13_v5 = vld [vmem:[%s109_s1] sm:$0xff] }
   0x3   :  { %v11_v6 = vld [vmem:[%s110_s0] sm:$0xff]  ;;  %v12_v7 = vld [vmem:[%s110_s0 + $0x8] sm:$0xff] }
   0x4   :  { %37 = vmatpush.msra.mxu0 %v17_v1  ;;  %59 = vmatpush.msra.mxu1 %v17_v1 }
   0x6   :  { %38 = vmatpush.msra.mxu0 %v16_v2  ;;  %60 = vmatpush.msra.mxu1 %v16_v2 }
   0x8   :  { %39 = vmatpush.msra.mxu0 %v15_v3  ;;  %61 = vmatpush.msra.mxu1 %v15_v3 }
   0xa   :  { %40 = vmatpush.msra.mxu0 %v14_v4  ;;  %62 = vmatpush.msra.mxu1 %v14_v4 }
   0xc   :  { %41 = vmatpush.msra.mxu0 %v13_v5  ;;  %63 = vmatpush.msra.mxu1 %v13_v5 }
   0xd   :  { %56 = vmatmul.msk.f32.vlgmr.msra.gmra.mxu0 %vm19_vm0, %v11_v6  ;;  %57 = vmatmul.msk.f32.vlgmr.msra.gmra.mxu1 %vm19_vm0, %v12_v7 }
  0x8a   :  { %v43_v8 = vpop.f32.mrf.mxu0  ;;  %v46_v9 = vpop.f32.mrf.mxu1 }
  0x8b   :  { %50 = vst.msk [vmem:[%s111_s2] sm:$0xff] %vm49_vm1, %v43_v8 }
  0x8c   :  { %51 = vst.msk [vmem:[%s111_s2 + $0x8] sm:$0xff] %vm49_vm1, %v46_v9 }

</bundles_post_ra>
